<compile_context>
chip_gen: v7x
topology: tpu7x:2x2x1
jax: 0.10.0
libtpu: 0.0.40
codegen_flags: <defaults>
</compile_context>

<pallas_src>
import functools

import jax
import jax.numpy as jnp
from jax.experimental import pallas as pl
from jax.experimental.pallas import tpu as pltpu

IN_DIM = 776
IN_DIM_PAD = 896      # next multiple of 128 -> clean MXU K passes
HID = 256
OUT_DIM = 1
DEFAULT_BLOCK_B = 512  # sweep 256/512 on v5e, 512/1024 on v6e/v7x


def _mlp_kernel(x_ref, w1_ref, b1_ref, w2_ref, b2_ref, w3_ref, b3_ref, o_ref):
    # fc1 + ReLU
    h1 = jnp.dot(x_ref[...], w1_ref[...], preferred_element_type=jnp.float32)
    h1 = jnp.maximum(h1 + b1_ref[...], 0.0)
    # fc2 + ReLU
    h2 = jnp.dot(h1, w2_ref[...], preferred_element_type=jnp.float32)
    h2 = jnp.maximum(h2 + b2_ref[...], 0.0)
    # fc3 + Tanh  (HID x 1: MXU-starved but a tiny fraction of total FLOPs)
    # TODO(synk): (TB, 1) output store is a masked vst; widen only if the
    # consumer can accept a lane-dense layout.
    h3 = jnp.dot(h2, w3_ref[...], preferred_element_type=jnp.float32)
    o_ref[...] = jnp.tanh(h3 + b3_ref[...]).astype(o_ref.dtype)


def _round_up(n, m):
    return ((n + m - 1) // m) * m


@functools.partial(jax.jit, static_argnames=("block_b",))
def neural_net_forward(x, params, *, block_b=DEFAULT_BLOCK_B):
    """Fused forward pass of NeuralNet (776 -> 256 -> 256 -> 1, relu/relu/tanh)."""
    w1, b1, w2, b2, w3, b3 = params
    B = x.shape[0]

    # Pad the fc1 K dimension once, outside the kernel (zero padding is exact).
    x_p = jnp.pad(x, ((0, 0), (0, IN_DIM_PAD - IN_DIM)))
    w1_p = jnp.pad(w1, ((0, IN_DIM_PAD - IN_DIM), (0, 0)))

    # Batch tile: multiple of 8 (f32 sublanes), no larger than (rounded) B.
    tb = min(block_b, _round_up(B, 8))
    grid = (pl.cdiv(B, tb),)

    # Weights/biases: constant index map -> fetched once, VMEM-resident.
    const = lambda shape: pl.BlockSpec(shape, lambda i: tuple(0 for _ in shape))

    return pl.pallas_call(
        _mlp_kernel,
        out_shape=jax.ShapeDtypeStruct((B, OUT_DIM), jnp.float32),
        grid=grid,
        in_specs=[
            pl.BlockSpec((tb, IN_DIM_PAD), lambda i: (i, 0)),   # x tile streams
            const((IN_DIM_PAD, HID)),
            const((1, HID)),
            const((HID, HID)),
            const((1, HID)),
            const((HID, OUT_DIM)),
            const((1, OUT_DIM)),
        ],
        out_specs=pl.BlockSpec((tb, OUT_DIM), lambda i: (i, 0)),
        compiler_params=pltpu.CompilerParams(
            # Batch tiles are independent -> shard across TCs on v7x megacore.
            dimension_semantics=("parallel",),
        ),
    )(x_p, w1_p, b1, w2, b2, w3, b3)


def init_params(key):
    """Deterministic init mimicking PyTorch nn.Linear default (uniform +-1/sqrt(fan_in)).

    Weights are stored as (in_features, out_features) — transposed vs. PyTorch.
    """
    def linear(k, fan_in, fan_out):
        kw, kb = jax.random.split(k)
        bound = 1.0 / (fan_in ** 0.5)
        w = jax.random.uniform(kw, (fan_in, fan_out), jnp.float32, -bound, bound)
        b = jax.random.uniform(kb, (1, fan_out), jnp.float32, -bound, bound)
        return w, b

    k1, k2, k3 = jax.random.split(key, 3)
    w1, b1 = linear(k1, IN_DIM, HID)
    w2, b2 = linear(k2, HID, HID)
    w3, b3 = linear(k3, HID, OUT_DIM)
    return (w1, b1, w2, b2, w3, b3)


def reference_forward(x, params):
    w1, b1, w2, b2, w3, b3 = params
    h = jnp.maximum(x @ w1 + b1, 0.0)
    h = jnp.maximum(h @ w2 + b2, 0.0)
    return jnp.tanh(h @ w3 + b3)


if __name__ == "__main__":
    key = jax.random.PRNGKey(0)
    kx, kp = jax.random.split(key)
    params = init_params(kp)

    # Small smoke test (single grid step, tb auto-clamped to 8).
    B = 8
    x = jax.random.normal(kx, (B, IN_DIM), jnp.float32)
    out = jax.block_until_ready(neural_net_forward(x, params))
    ref = reference_forward(x, params)
    assert out.shape == (B, OUT_DIM), out.shape
    assert jnp.allclose(out, ref, atol=1e-5, rtol=1e-5), "mismatch vs reference (small)"

    # Larger batch exercising the tiled/pipelined grid (incl. a partial tile).
    B2 = 1000
    x2 = jax.random.normal(kx, (B2, IN_DIM), jnp.float32)
    out2 = jax.block_until_ready(neural_net_forward(x2, params))
    ref2 = reference_forward(x2, params)
    assert out2.shape == (B2, OUT_DIM), out2.shape
    assert jnp.allclose(out2, ref2, atol=1e-5, rtol=1e-5), "mismatch vs reference (tiled)"

    print("KERNEL_OK")
</pallas_src>

<mosaic_0001>
module attributes {stable_mosaic.version = 11 : i64} {
  func.func @_mlp_kernel(%arg0: i32, %arg1: memref<8x896xf32, #tpu.memory_space<vmem>>, %arg2: memref<896x256xf32, #tpu.memory_space<vmem>>, %arg3: memref<1x256xf32, #tpu.memory_space<vmem>>, %arg4: memref<256x256xf32, #tpu.memory_space<vmem>>, %arg5: memref<1x256xf32, #tpu.memory_space<vmem>>, %arg6: memref<256x1xf32, #tpu.memory_space<vmem>>, %arg7: memref<1x1xf32, #tpu.memory_space<vmem>>, %arg8: memref<8x1xf32, #tpu.memory_space<vmem>>) attributes {dimension_semantics = [#tpu.dimension_semantics<parallel>], iteration_bounds = array<i64: 1>, scalar_prefetch = 0 : i64, scratch_operands = 0 : i64, tpu.core_type = #tpu.core_type<tc>, window_params = [{transform_indices = @transform_0, window_bounds = array<i64: 8, 896>}, {pipeline_mode = #tpu.pipeline_mode<synchronous>, transform_indices = @transform_1, window_bounds = array<i64: 896, 256>}, {pipeline_mode = #tpu.pipeline_mode<synchronous>, transform_indices = @transform_2, window_bounds = array<i64: 1, 256>}, {pipeline_mode = #tpu.pipeline_mode<synchronous>, transform_indices = @transform_3, window_bounds = array<i64: 256, 256>}, {pipeline_mode = #tpu.pipeline_mode<synchronous>, transform_indices = @transform_4, window_bounds = array<i64: 1, 256>}, {pipeline_mode = #tpu.pipeline_mode<synchronous>, transform_indices = @transform_5, window_bounds = array<i64: 256, 1>}, {pipeline_mode = #tpu.pipeline_mode<synchronous>, transform_indices = @transform_6, window_bounds = array<i64: 1, 1>}, {transform_indices = @transform_7, window_bounds = array<i64: 8, 1>}]} {
    %c0 = arith.constant 0 : index
    %c0_0 = arith.constant 0 : index
    %0 = vector.load %arg1[%c0, %c0_0] : memref<8x896xf32, #tpu.memory_space<vmem>>, vector<8x896xf32>
    %c0_1 = arith.constant 0 : index
    %c0_2 = arith.constant 0 : index
    %1 = vector.load %arg2[%c0_1, %c0_2] : memref<896x256xf32, #tpu.memory_space<vmem>>, vector<896x256xf32>
    %cst = arith.constant dense<0.000000e+00> : vector<8x256xf32>
    %2 = tpu.matmul %0, %1, %cst {dimension_numbers = #tpu.dot_dimension_numbers<[1], [0], [0], [1], [0, 0, 1, 1], [], []>} : vector<8x896xf32>, vector<896x256xf32>, vector<8x256xf32> -> vector<8x256xf32>
    %c0_3 = arith.constant 0 : index
    %c0_4 = arith.constant 0 : index
    %3 = vector.load %arg3[%c0_3, %c0_4] : memref<1x256xf32, #tpu.memory_space<vmem>>, vector<1x256xf32>
    %4 = vector.broadcast %3 : vector<1x256xf32> to vector<8x256xf32>
    %5 = arith.addf %2, %4 : vector<8x256xf32>
    %cst_5 = arith.constant 0.000000e+00 : f32
    %6 = vector.broadcast %cst_5 : f32 to vector<8x256xf32>
    %7 = arith.maximumf %5, %6 : vector<8x256xf32>
    %c0_6 = arith.constant 0 : index
    %c0_7 = arith.constant 0 : index
    %8 = vector.load %arg4[%c0_6, %c0_7] : memref<256x256xf32, #tpu.memory_space<vmem>>, vector<256x256xf32>
    %cst_8 = arith.constant dense<0.000000e+00> : vector<8x256xf32>
    %9 = tpu.matmul %7, %8, %cst_8 {dimension_numbers = #tpu.dot_dimension_numbers<[1], [0], [0], [1], [0, 0, 1, 1], [], []>} : vector<8x256xf32>, vector<256x256xf32>, vector<8x256xf32> -> vector<8x256xf32>
    %c0_9 = arith.constant 0 : index
    %c0_10 = arith.constant 0 : index
    %10 = vector.load %arg5[%c0_9, %c0_10] : memref<1x256xf32, #tpu.memory_space<vmem>>, vector<1x256xf32>
    %11 = vector.broadcast %10 : vector<1x256xf32> to vector<8x256xf32>
    %12 = arith.addf %9, %11 : vector<8x256xf32>
    %cst_11 = arith.constant 0.000000e+00 : f32
    %13 = vector.broadcast %cst_11 : f32 to vector<8x256xf32>
    %14 = arith.maximumf %12, %13 : vector<8x256xf32>
    %c0_12 = arith.constant 0 : index
    %c0_13 = arith.constant 0 : index
    %15 = vector.load %arg6[%c0_12, %c0_13] : memref<256x1xf32, #tpu.memory_space<vmem>>, vector<256x1xf32>
    %cst_14 = arith.constant dense<0.000000e+00> : vector<8x1xf32>
    %16 = tpu.matmul %14, %15, %cst_14 {dimension_numbers = #tpu.dot_dimension_numbers<[1], [0], [0], [1], [0, 0, 1, 1], [], []>} : vector<8x256xf32>, vector<256x1xf32>, vector<8x1xf32> -> vector<8x1xf32>
    %c0_15 = arith.constant 0 : index
    %c0_16 = arith.constant 0 : index
    %17 = vector.load %arg7[%c0_15, %c0_16] : memref<1x1xf32, #tpu.memory_space<vmem>>, vector<1x1xf32>
    %18 = vector.broadcast %17 : vector<1x1xf32> to vector<8x1xf32>
    %19 = arith.addf %16, %18 : vector<8x1xf32>
    %20 = math.tanh %19 : vector<8x1xf32>
    %c0_17 = arith.constant 0 : index
    %c0_18 = arith.constant 0 : index
    %21 = vector.load %arg8[%c0_17, %c0_18] : memref<8x1xf32, #tpu.memory_space<vmem>>, vector<8x1xf32>
    tpu.vector_store %arg8[%c0_17, %c0_18], %20 {strides = array<i32>} : memref<8x1xf32, #tpu.memory_space<vmem>>, vector<8x1xf32>,
    return
  }
  func.func @transform_0(%arg0: i32) -> (i32, i32) {
    %c0_i32 = arith.constant 0 : i32
    %c0_i32_0 = arith.constant 0 : i32
    return %arg0, %c0_i32 : i32, i32
  }
  func.func @transform_1(%arg0: i32) -> (i32, i32) {
    %c0_i32 = arith.constant 0 : i32
    %c0_i32_0 = arith.constant 0 : i32
    %c0_i32_1 = arith.constant 0 : i32
    return %c0_i32, %c0_i32_0 : i32, i32
  }
  func.func @transform_2(%arg0: i32) -> (i32, i32) {
    %c0_i32 = arith.constant 0 : i32
    %c0_i32_0 = arith.constant 0 : i32
    %c0_i32_1 = arith.constant 0 : i32
    return %c0_i32, %c0_i32_0 : i32, i32
  }
  func.func @transform_3(%arg0: i32) -> (i32, i32) {
    %c0_i32 = arith.constant 0 : i32
    %c0_i32_0 = arith.constant 0 : i32
    %c0_i32_1 = arith.constant 0 : i32
    return %c0_i32, %c0_i32_0 : i32, i32
  }
  func.func @transform_4(%arg0: i32) -> (i32, i32) {
    %c0_i32 = arith.constant 0 : i32
    %c0_i32_0 = arith.constant 0 : i32
    %c0_i32_1 = arith.constant 0 : i32
    return %c0_i32, %c0_i32_0 : i32, i32
  }
  func.func @transform_5(%arg0: i32) -> (i32, i32) {
    %c0_i32 = arith.constant 0 : i32
    %c0_i32_0 = arith.constant 0 : i32
    %c0_i32_1 = arith.constant 0 : i32
    return %c0_i32, %c0_i32_0 : i32, i32
  }
  func.func @transform_6(%arg0: i32) -> (i32, i32) {
    %c0_i32 = arith.constant 0 : i32
    %c0_i32_0 = arith.constant 0 : i32
    %c0_i32_1 = arith.constant 0 : i32
    return %c0_i32, %c0_i32_0 : i32, i32
  }
  func.func @transform_7(%arg0: i32) -> (i32, i32) {
    %c0_i32 = arith.constant 0 : i32
    %c0_i32_0 = arith.constant 0 : i32
    return %arg0, %c0_i32 : i32, i32
  }
}

</mosaic_0001>

<bundles_post_ra>
// kernel: neural_net_forward.1
= control target key start
LH: loop header
LB: loop body
LE: loop exit
PB: predicated region body
PF: predicated region fallthrough
CT: control target
= control target key end

     0   :  { %vm816_vm0 = vcmask 7168   ;;  %s2235_s1 = inlined_call_operand.vmem [shape: f32[896,256], index: 1, kind: input, shape index: {}]   ;;  %s2236_s0 = inlined_call_operand.vmem [shape: f32[8,896], index: 0, kind: input, shape index: {}]   ;;  %s2237_s3 = inlined_call_operand.vmem [shape: f32[256,256], index: 3, kind: input, shape index: {}]   ;;  %s2238_s5 = inlined_call_operand.vmem [shape: f32[256,1], index: 5, kind: input, shape index: {}]   ;;  %s2239_s2 = inlined_call_operand.vmem [shape: f32[1,256], index: 2, kind: input, shape index: {}]   ;;  %s2240_s4 = inlined_call_operand.vmem [shape: f32[1,256], index: 4, kind: input, shape index: {}]   ;;  %s2241_s6 = inlined_call_operand.<no memory space> [shape: f32[1,1], index: 6, kind: input, shape index: {}]   ;;  %s2242_s7 = inlined_call_operand.vmem [shape: f32[8,1], index: 7, kind: output, shape index: {}]  }
   0x1   :  { %v100_v0 = vld [vmem:[%s2235_s1 + $0x208] sm:$0xff]  ;;  %v102_v1 = vld [vmem:[%s2235_s1 + $0x218] sm:$0xff]  ;;  %v99_v2 = vld [vmem:[%s2235_s1 + $0x200] sm:$0xff] }
   0x2   :  { %v922_v3 = vpack.c.bf16 %v102_v1, %v100_v0  ;;  %v101_v4 = vld [vmem:[%s2235_s1 + $0x210] sm:$0xff]  ;;  %v104_v5 = vld [vmem:[%s2235_s1 + $0x228] sm:$0xff]  ;;  %v106_v6 = vld [vmem:[%s2235_s1 + $0x238] sm:$0xff] }
   0x3   :  { %v924_v7 = vpack.c.bf16 %v101_v4, %v99_v2  ;;  %v926_v8 = vpack.c.bf16 %v106_v6, %v104_v5  ;;  %v103_v9 = vld [vmem:[%s2235_s1 + $0x220] sm:$0xff]  ;;  %v105_v10 = vld [vmem:[%s2235_s1 + $0x230] sm:$0xff]  ;;  %v108_v11 = vld [vmem:[%s2235_s1 + $0x248] sm:$0xff] }
   0x4   :  { %923 = vmatprep.subr.bf16.mxu0 %v922_v3  ;;  %v110_v12 = vld [vmem:[%s2235_s1 + $0x258] sm:$0xff]  ;;  %v928_v13 = vpack.c.bf16 %v105_v10, %v103_v9  ;;  %v107_v15 = vld [vmem:[%s2235_s1 + $0x240] sm:$0xff]  ;;  %v109_v16 = vld [vmem:[%s2235_s1 + $0x250] sm:$0xff] }
   0x5   :  { %925 = vmatpush1.bf16.msra.mxu0 %v924_v7  ;;  %v930_v14 = vpack.c.bf16 %v110_v12, %v108_v11  ;;  %v112_v17 = vld [vmem:[%s2235_s1 + $0x268] sm:$0xff]  ;;  %v114_v18 = vld [vmem:[%s2235_s1 + $0x278] sm:$0xff]  ;;  %v932_v19 = vpack.c.bf16 %v109_v16, %v107_v15  ;;  %v111_v21 = vld [vmem:[%s2235_s1 + $0x260] sm:$0xff] }
   0x6   :  { %927 = vmatprep.subr.bf16.mxu0 %v926_v8  ;;  %v934_v20 = vpack.c.bf16 %v114_v18, %v112_v17  ;;  %v113_v22 = vld [vmem:[%s2235_s1 + $0x270] sm:$0xff]  ;;  %v116_v23 = vld [vmem:[%s2235_s1 + $0x288] sm:$0xff]  ;;  %v118_v24 = vld [vmem:[%s2235_s1 + $0x298] sm:$0xff] }
   0x7   :  { %v936_v25 = vpack.c.bf16 %v113_v22, %v111_v21  ;;  %v938_v26 = vpack.c.bf16 %v118_v24, %v116_v23  ;;  %v115_v27 = vld [vmem:[%s2235_s1 + $0x280] sm:$0xff]  ;;  %v117_v28 = vld [vmem:[%s2235_s1 + $0x290] sm:$0xff]  ;;  %v120_v29 = vld [vmem:[%s2235_s1 + $0x2a8] sm:$0xff] }
   0x8   :  { %v122_v30 = vld [vmem:[%s2235_s1 + $0x2b8] sm:$0xff]  ;;  %v940_v31 = vpack.c.bf16 %v117_v28, %v115_v27  ;;  %v119_v33 = vld [vmem:[%s2235_s1 + $0x2a0] sm:$0xff]  ;;  %v121_v34 = vld [vmem:[%s2235_s1 + $0x2b0] sm:$0xff] }
   0x9   :  { %929 = vmatpush1.bf16.msra.mxu0 %v928_v13  ;;  %v942_v32 = vpack.c.bf16 %v122_v30, %v120_v29  ;;  %v124_v35 = vld [vmem:[%s2235_s1 + $0x2c8] sm:$0xff]  ;;  %v126_v36 = vld [vmem:[%s2235_s1 + $0x2d8] sm:$0xff]  ;;  %v944_v37 = vpack.c.bf16 %v121_v34, %v119_v33  ;;  %v123_v39 = vld [vmem:[%s2235_s1 + $0x2c0] sm:$0xff] }
   0xa   :  { %931 = vmatprep.subr.bf16.mxu0 %v930_v14  ;;  %v946_v38 = vpack.c.bf16 %v126_v36, %v124_v35  ;;  %v125_v40 = vld [vmem:[%s2235_s1 + $0x2d0] sm:$0xff]  ;;  %v31_v41 = vld [vmem:[%s2236_s0 + $0x18] sm:$0xff]  ;;  %v128_v42 = vld [vmem:[%s2235_s1 + $0x2e8] sm:$0xff] }
   0xb   :  { %v130_v43 = vld [vmem:[%s2235_s1 + $0x2f8] sm:$0xff]  ;;  %406 = vmatprep.mubr.f32.mxu0 %v31_v41  ;;  %v948_v44 = vpack.c.bf16 %v125_v40, %v123_v39  ;;  %v127_v46 = vld [vmem:[%s2235_s1 + $0x2e0] sm:$0xff]  ;;  %v129_v47 = vld [vmem:[%s2235_s1 + $0x2f0] sm:$0xff] }
   0xc   :  { %v950_v45 = vpack.c.bf16 %v130_v43, %v128_v42  ;;  %v132_v48 = vld [vmem:[%s2235_s1 + $0x308] sm:$0xff]  ;;  %v134_v49 = vld [vmem:[%s2235_s1 + $0x318] sm:$0xff]  ;;  %v952_v50 = vpack.c.bf16 %v129_v47, %v127_v46  ;;  %v131_v52 = vld [vmem:[%s2235_s1 + $0x300] sm:$0xff] }
   0xd   :  { %933 = vmatpush1.bf16.msra.mxu0 %v932_v19  ;;  %v954_v51 = vpack.c.bf16 %v134_v49, %v132_v48  ;;  %v133_v53 = vld [vmem:[%s2235_s1 + $0x310] sm:$0xff]  ;;  %v136_v54 = vld [vmem:[%s2235_s1 + $0x328] sm:$0xff]  ;;  %v138_v55 = vld [vmem:[%s2235_s1 + $0x338] sm:$0xff] }
   0xe   :  { %935 = vmatprep.subr.bf16.mxu0 %v934_v20  ;;  %v956_v56 = vpack.c.bf16 %v133_v53, %v131_v52  ;;  %v135_v57 = vld [vmem:[%s2235_s1 + $0x320] sm:$0xff]  ;;  %v36_v58 = vld [vmem:[%s2235_s1 + $0x8] sm:$0xff]  ;;  %v38_v59 = vld [vmem:[%s2235_s1 + $0x18] sm:$0xff]  ;;  %v958_v60 = vpack.c.bf16 %v138_v55, %v136_v54 }
   0xf   :  { %v137_v61 = vld [vmem:[%s2235_s1 + $0x330] sm:$0xff]  ;;  %v858_v62 = vpack.c.bf16 %v38_v59, %v36_v58  ;;  %v35_v63 = vld [vmem:[%s2235_s1] sm:$0xff]  ;;  %v140_v1 = vld [vmem:[%s2235_s1 + $0x348] sm:$0xff] }
  0x10   :  { %v37_v0 = vld [vmem:[%s2235_s1 + $0x10] sm:$0xff]  ;;  %v142_v2 = vld [vmem:[%s2235_s1 + $0x358] sm:$0xff]  ;;  %v40_v4 = vld [vmem:[%s2235_s1 + $0x28] sm:$0xff]  ;;  %v960_v6 = vpack.c.bf16 %v137_v61, %v135_v57 }
  0x11   :  { %937 = vmatpush1.bf16.msra.mxu0 %v936_v25  ;;  %v860_v3 = vpack.c.bf16 %v37_v0, %v35_v63  ;;  %859 = vmatprep.subr.bf16.mxu1 %v858_v62  ;;  %v42_v5 = vld [vmem:[%s2235_s1 + $0x38] sm:$0xff]  ;;  %v139_v7 = vld [vmem:[%s2235_s1 + $0x340] sm:$0xff]  ;;  %v41_v10 = vld [vmem:[%s2235_s1 + $0x30] sm:$0xff]  ;;  %v962_v11 = vpack.c.bf16 %v142_v2, %v140_v1 }
  0x12   :  { %939 = vmatprep.subr.bf16.mxu0 %v938_v26  ;;  %v862_v8 = vpack.c.bf16 %v42_v5, %v40_v4  ;;  %v39_v9 = vld [vmem:[%s2235_s1 + $0x20] sm:$0xff]  ;;  %v141_v12 = vld [vmem:[%s2235_s1 + $0x350] sm:$0xff]  ;;  %v44_v14 = vld [vmem:[%s2235_s1 + $0x48] sm:$0xff] }
  0x13   :  { %861 = vmatpush1.bf16.msra.mxu1 %v860_v3  ;;  %v864_v13 = vpack.c.bf16 %v41_v10, %v39_v9  ;;  %v46_v15 = vld [vmem:[%s2235_s1 + $0x58] sm:$0xff]  ;;  %v144_v16 = vld [vmem:[%s2235_s1 + $0x368] sm:$0xff]  ;;  %v43_v19 = vld [vmem:[%s2235_s1 + $0x40] sm:$0xff]  ;;  %v964_v21 = vpack.c.bf16 %v141_v12, %v139_v7 }
  0x14   :  { %v146_v17 = vld [vmem:[%s2235_s1 + $0x378] sm:$0xff]  ;;  %863 = vmatprep.subr.bf16.mxu1 %v862_v8  ;;  %v866_v18 = vpack.c.bf16 %v46_v15, %v44_v14  ;;  %v45_v20 = vld [vmem:[%s2235_s1 + $0x50] sm:$0xff]  ;;  %v143_v22 = vld [vmem:[%s2235_s1 + $0x360] sm:$0xff] }
  0x15   :  { %941 = vmatpush1.bf16.msra.mxu0 %v940_v31  ;;  %v868_v23 = vpack.c.bf16 %v45_v20, %v43_v19  ;;  %v48_v24 = vld [vmem:[%s2235_s1 + $0x68] sm:$0xff]  ;;  %v50_v25 = vld [vmem:[%s2235_s1 + $0x78] sm:$0xff]  ;;  %v966_v26 = vpack.c.bf16 %v146_v17, %v144_v16  ;;  %v145_v27 = vld [vmem:[%s2235_s1 + $0x370] sm:$0xff] }
  0x16   :  { %943 = vmatprep.subr.bf16.mxu0 %v942_v32  ;;  %v870_v28 = vpack.c.bf16 %v50_v25, %v48_v24  ;;  %v47_v29 = vld [vmem:[%s2235_s1 + $0x60] sm:$0xff]  ;;  %v49_v30 = vld [vmem:[%s2235_s1 + $0x70] sm:$0xff]  ;;  %v148_v31 = vld [vmem:[%s2235_s1 + $0x388] sm:$0xff]  ;;  %v968_v35 = vpack.c.bf16 %v145_v27, %v143_v22 }
  0x17   :  { %865 = vmatpush1.bf16.msra.mxu1 %v864_v13  ;;  %v150_v32 = vld [vmem:[%s2235_s1 + $0x398] sm:$0xff]  ;;  %v52_v33 = vld [vmem:[%s2235_s1 + $0x88] sm:$0xff]  ;;  %v147_v36 = vld [vmem:[%s2235_s1 + $0x380] sm:$0xff] }
  0x18   :  { %867 = vmatprep.subr.bf16.mxu1 %v866_v18  ;;  %v54_v34 = vld [vmem:[%s2235_s1 + $0x98] sm:$0xff]  ;;  %v970_v39 = vpack.c.bf16 %v150_v32, %v148_v31  ;;  %v152_v40 = vld [vmem:[%s2235_s1 + $0x3a8] sm:$0xff]  ;;  %v51_v42 = vld [vmem:[%s2235_s1 + $0x80] sm:$0xff] }
  0x19   :  { %945 = vmatpush1.bf16.msra.mxu0 %v944_v37  ;;  %v149_v37 = vld [vmem:[%s2235_s1 + $0x390] sm:$0xff]  ;;  %v874_v41 = vpack.c.bf16 %v54_v34, %v52_v33  ;;  %v58_v46 = vld [vmem:[%s2235_s1 + $0xb8] sm:$0xff]  ;;  %v151_v48 = vld [vmem:[%s2235_s1 + $0x3a0] sm:$0xff] }
  0x1a   :  { %947 = vmatprep.subr.bf16.mxu0 %v946_v38  ;;  %v872_v38 = vpack.c.bf16 %v49_v30, %v47_v29  ;;  %v53_v43 = vld [vmem:[%s2235_s1 + $0x90] sm:$0xff]  ;;  %v972_v47 = vpack.c.bf16 %v149_v37, %v147_v36  ;;  %v156_v52 = vld [vmem:[%s2235_s1 + $0x3c8] sm:$0xff]  ;;  %v55_v54 = vld [vmem:[%s2235_s1 + $0xa0] sm:$0xff] }
  0x1b   :  { %869 = vmatpush1.bf16.msra.mxu1 %v868_v23  ;;  %v153_v49 = vld [vmem:[%s2235_s1 + $0x3b0] sm:$0xff]  ;;  %v60_v57 = vld [vmem:[%s2235_s1 + $0xc8] sm:$0xff]  ;;  %v62_v58 = vld [vmem:[%s2235_s1 + $0xd8] sm:$0xff] }
  0x1c   :  { %871 = vmatprep.subr.bf16.mxu1 %v870_v28  ;;  %v57_v55 = vld [vmem:[%s2235_s1 + $0xb0] sm:$0xff]  ;;  %v976_v59 = vpack.c.bf16 %v153_v49, %v151_v48  ;;  %v160_v0 = vld [vmem:[%s2235_s1 + $0x3e8] sm:$0xff]  ;;  %v882_v1 = vpack.c.bf16 %v62_v58, %v60_v57  ;;  %v59_v2 = vld [vmem:[%s2235_s1 + $0xc0] sm:$0xff] }
  0x1d   :  { %949 = vmatpush1.bf16.msra.mxu0 %v948_v44  ;;  %v154_v44 = vld [vmem:[%s2235_s1 + $0x3b8] sm:$0xff]  ;;  %v157_v61 = vld [vmem:[%s2235_s1 + $0x3d0] sm:$0xff]  ;;  %v880_v62 = vpack.c.bf16 %v57_v55, %v55_v54  ;;  %v64_v5 = vld [vmem:[%s2235_s1 + $0xe8] sm:$0xff] }
  0x1e   :  { %951 = vmatprep.subr.bf16.mxu0 %v950_v45  ;;  %v56_v45 = vld [vmem:[%s2235_s1 + $0xa8] sm:$0xff]  ;;  %v61_v3 = vld [vmem:[%s2235_s1 + $0xd0] sm:$0xff]  ;;  %v162_v4 = vld [vmem:[%s2235_s1 + $0x3f8] sm:$0xff] }
  0x1f   :  { %873 = vmatpush1.bf16.msra.mxu1 %v872_v38  ;;  %v878_v53 = vpack.c.bf16 %v58_v46, %v56_v45  ;;  %v159_v8 = vld [vmem:[%s2235_s1 + $0x3e0] sm:$0xff]  ;;  %v161_v9 = vld [vmem:[%s2235_s1 + $0x3f0] sm:$0xff]  ;;  %v884_v10 = vpack.c.bf16 %v61_v3, %v59_v2  ;;  %v164_v12 = vld [vmem:[%s2235_s1 + $0x408] sm:$0xff] }
  0x20   :  { %875 = vmatprep.subr.bf16.mxu1 %v874_v41  ;;  %v63_v14 = vld [vmem:[%s2235_s1 + $0xe0] sm:$0xff]  ;;  %v65_v15 = vld [vmem:[%s2235_s1 + $0xf0] sm:$0xff]  ;;  %v166_v16 = vld [vmem:[%s2235_s1 + $0x418] sm:$0xff]  ;;  %v984_v19 = vpack.c.bf16 %v161_v9, %v159_v8 }
  0x21   :  { %953 = vmatpush1.bf16.msra.mxu0 %v952_v50  ;;  %v876_v50 = vpack.c.bf16 %v53_v43, %v51_v42  ;;  %v68_v17 = vld [vmem:[%s2235_s1 + $0x108] sm:$0xff]  ;;  %v70_v18 = vld [vmem:[%s2235_s1 + $0x118] sm:$0xff]  ;;  %v163_v20 = vld [vmem:[%s2235_s1 + $0x400] sm:$0xff]  ;;  %v986_v22 = vpack.c.bf16 %v166_v16, %v164_v12 }
  0x22   :  { %955 = vmatprep.subr.bf16.mxu0 %v954_v51  ;;  %v974_v51 = vpack.c.bf16 %v154_v44, %v152_v40  ;;  %v165_v23 = vld [vmem:[%s2235_s1 + $0x410] sm:$0xff]  ;;  %v890_v24 = vpack.c.bf16 %v70_v18, %v68_v17  ;;  %v67_v25 = vld [vmem:[%s2235_s1 + $0x100] sm:$0xff]  ;;  %v168_v27 = vld [vmem:[%s2235_s1 + $0x428] sm:$0xff] }
  0x23   :  { %877 = vmatpush1.bf16.msra.mxu1 %v876_v50  ;;  %v170_v28 = vld [vmem:[%s2235_s1 + $0x438] sm:$0xff]  ;;  %v30_v29 = vld [vmem:[%s2236_s0 + $0x10] sm:$0xff]  ;;  %v72_v30 = vld [vmem:[%s2235_s1 + $0x128] sm:$0xff]  ;;  %v988_v32 = vpack.c.bf16 %v165_v23, %v163_v20 }
  0x24   :  { %879 = vmatprep.subr.bf16.mxu1 %v878_v53  ;;  %v74_v31 = vld [vmem:[%s2235_s1 + $0x138] sm:$0xff]  ;;  %v167_v33 = vld [vmem:[%s2235_s1 + $0x420] sm:$0xff]  ;;  %v169_v34 = vld [vmem:[%s2235_s1 + $0x430] sm:$0xff]  ;;  %v990_v37 = vpack.c.bf16 %v170_v28, %v168_v27 }
  0x25   :  { %957 = vmatpush1.bf16.msra.mxu0 %v956_v56  ;;  %v158_v56 = vld [vmem:[%s2235_s1 + $0x3d8] sm:$0xff]  ;;  %v73_v40 = vld [vmem:[%s2235_s1 + $0x130] sm:$0xff]  ;;  %v33_v41 = vld [vmem:[%s2236_s0 + $0x28] sm:$0xff]  ;;  %v894_v42 = vpack.c.bf16 %v74_v31, %v72_v30  ;;  %v992_v45 = vpack.c.bf16 %v169_v34, %v167_v33 }
  0x26   :  { %959 = vmatprep.subr.bf16.mxu0 %v958_v60  ;;  %v155_v60 = vld [vmem:[%s2235_s1 + $0x3c0] sm:$0xff]  ;;  %v978_v63 = vpack.c.bf16 %v158_v56, %v156_v52  ;;  %v174_v38 = vld [vmem:[%s2235_s1 + $0x458] sm:$0xff]  ;;  %v76_v43 = vld [vmem:[%s2235_s1 + $0x148] sm:$0xff] }
  0x27   :  { %v980_v7 = vpack.c.bf16 %v157_v61, %v155_v60  ;;  %881 = vmatpush1.bf16.msra.mxu1 %v880_v62  ;;  %v78_v44 = vld [vmem:[%s2235_s1 + $0x158] sm:$0xff]  ;;  %v171_v46 = vld [vmem:[%s2235_s1 + $0x440] sm:$0xff]  ;;  %v176_v50 = vld [vmem:[%s2235_s1 + $0x468] sm:$0xff] }
  0x28   :  { %883 = vmatprep.subr.bf16.mxu1 %v882_v1  ;;  %v75_v52 = vld [vmem:[%s2235_s1 + $0x140] sm:$0xff]  ;;  %v77_v53 = vld [vmem:[%s2235_s1 + $0x150] sm:$0xff]  ;;  %v178_v54 = vld [vmem:[%s2235_s1 + $0x478] sm:$0xff] }
  0x29   :  { %961 = vmatpush1.bf16.msra.mxu0 %v960_v6  ;;  %v66_v6 = vld [vmem:[%s2235_s1 + $0xf8] sm:$0xff]  ;;  %v80_v55 = vld [vmem:[%s2235_s1 + $0x168] sm:$0xff]  ;;  %v175_v58 = vld [vmem:[%s2235_s1 + $0x460] sm:$0xff]  ;;  %v900_v61 = vpack.c.bf16 %v77_v53, %v75_v52  ;;  %v998_v62 = vpack.c.bf16 %v178_v54, %v176_v50 }
  0x2a   :  { %963 = vmatprep.subr.bf16.mxu0 %v962_v11  ;;  %v982_v11 = vpack.c.bf16 %v162_v4, %v160_v0  ;;  %v886_v13 = vpack.c.bf16 %v66_v6, %v64_v5  ;;  %v82_v56 = vld [vmem:[%s2235_s1 + $0x178] sm:$0xff]  ;;  %v180_v60 = vld [vmem:[%s2235_s1 + $0x488] sm:$0xff]  ;;  %v79_v1 = vld [vmem:[%s2235_s1 + $0x160] sm:$0xff] }
  0x2b   :  { %885 = vmatpush1.bf16.msra.mxu1 %v884_v10  ;;  %v902_v0 = vpack.c.bf16 %v82_v56, %v80_v55  ;;  %v81_v2 = vld [vmem:[%s2235_s1 + $0x170] sm:$0xff]  ;;  %v84_v3 = vld [vmem:[%s2235_s1 + $0x188] sm:$0xff]  ;;  %v86_v4 = vld [vmem:[%s2235_s1 + $0x198] sm:$0xff] }
  0x2c   :  { %887 = vmatprep.subr.bf16.mxu1 %v886_v13  ;;  %v29_v5 = vld [vmem:[%s2236_s0 + $0x8] sm:$0xff]  ;;  %v181_v8 = vld [vmem:[%s2235_s1 + $0x490] sm:$0xff]  ;;  %v904_v9 = vpack.c.bf16 %v81_v2, %v79_v1  ;;  %v906_v12 = vpack.c.bf16 %v86_v4, %v84_v3  ;;  %v83_v13 = vld [vmem:[%s2235_s1 + $0x180] sm:$0xff] }
  0x2d   :  { %965 = vmatpush1.bf16.msra.mxu0 %v964_v21  ;;  %v888_v21 = vpack.c.bf16 %v65_v15, %v63_v14  ;;  %335 = vmatprep.mubr.f32.mxu1 %v29_v5  ;;  %v85_v14 = vld [vmem:[%s2235_s1 + $0x190] sm:$0xff]  ;;  %v186_v15 = vld [vmem:[%s2235_s1 + $0x4b8] sm:$0xff]  ;;  %v88_v16 = vld [vmem:[%s2235_s1 + $0x1a8] sm:$0xff] }
  0x2e   :  { %967 = vmatprep.subr.bf16.mxu0 %v966_v26  ;;  %v69_v26 = vld [vmem:[%s2235_s1 + $0x110] sm:$0xff]  ;;  %v90_v17 = vld [vmem:[%s2235_s1 + $0x1b8] sm:$0xff]  ;;  %v188_v23 = vld [vmem:[%s2235_s1 + $0x4c8] sm:$0xff] }
  0x2f   :  { %889 = vmatpush1.bf16.msra.mxu1 %v888_v21  ;;  %v892_v36 = vpack.c.bf16 %v69_v26, %v67_v25  ;;  %v185_v20 = vld [vmem:[%s2235_s1 + $0x4b0] sm:$0xff]  ;;  %v908_v21 = vpack.c.bf16 %v85_v14, %v83_v13  ;;  %v87_v25 = vld [vmem:[%s2235_s1 + $0x1a0] sm:$0xff]  ;;  %v190_v27 = vld [vmem:[%s2235_s1 + $0x4d8] sm:$0xff] }
  0x30   :  { %891 = vmatprep.subr.bf16.mxu1 %v890_v24  ;;  %v910_v24 = vpack.c.bf16 %v90_v17, %v88_v16  ;;  %v89_v26 = vld [vmem:[%s2235_s1 + $0x1b0] sm:$0xff]  ;;  %v92_v28 = vld [vmem:[%s2235_s1 + $0x1c8] sm:$0xff]  ;;  %v187_v31 = vld [vmem:[%s2235_s1 + $0x4c0] sm:$0xff]  ;;  %v1010_v34 = vpack.c.bf16 %v190_v27, %v188_v23 }
  0x31   :  { %969 = vmatpush1.bf16.msra.mxu0 %v968_v35  ;;  %v172_v35 = vld [vmem:[%s2235_s1 + $0x448] sm:$0xff]  ;;  %v912_v33 = vpack.c.bf16 %v89_v26, %v87_v25  ;;  %v97_v50 = vld [vmem:[%s2235_s1 + $0x1f0] sm:$0xff]  ;;  %v560_v53 = vld [vmem:[%s2237_s3 + $0x18] sm:$0xff] }
  0x32   :  { %971 = vmatprep.subr.bf16.mxu0 %v970_v39  ;;  %v71_v39 = vld [vmem:[%s2235_s1 + $0x120] sm:$0xff]  ;;  %v994_v49 = vpack.c.bf16 %v174_v38, %v172_v35  ;;  %v192_v35 = vld [vmem:[%s2235_s1 + $0x4e8] sm:$0xff]  ;;  %v93_v38 = vld [vmem:[%s2235_s1 + $0x1d0] sm:$0xff] }
  0x33   :  { %893 = vmatpush1.bf16.msra.mxu1 %v892_v36  ;;  %v896_v48 = vpack.c.bf16 %v73_v40, %v71_v39  ;;  %v194_v39 = vld [vmem:[%s2235_s1 + $0x4f8] sm:$0xff]  ;;  %v96_v40 = vld [vmem:[%s2235_s1 + $0x1e8] sm:$0xff]  ;;  %v195_v55 = vld [vmem:[%s2235_s1 + $0x500] sm:$0xff] }
  0x34   :  { %895 = vmatprep.subr.bf16.mxu1 %v894_v42  ;;  %v558_v52 = vld [vmem:[%s2237_s3 + $0x8] sm:$0xff]  ;;  %v197_v56 = vld [vmem:[%s2235_s1 + $0x510] sm:$0xff]  ;;  %v564_v1 = vld [vmem:[%s2237_s3 + $0x38] sm:$0xff] }
  0x35   :  { %973 = vmatpush1.bf16.msra.mxu0 %v972_v47  ;;  %v173_v47 = vld [vmem:[%s2235_s1 + $0x450] sm:$0xff]  ;;  %v1020_v2 = vpack.c.bf16 %v197_v56, %v195_v55  ;;  %v199_v3 = vld [vmem:[%s2235_s1 + $0x520] sm:$0xff]  ;;  %v566_v13 = vld [vmem:[%s2237_s3 + $0x48] sm:$0xff] }
  0x36   :  { %975 = vmatprep.subr.bf16.mxu0 %v974_v51  ;;  %v898_v51 = vpack.c.bf16 %v78_v44, %v76_v43  ;;  %v996_v57 = vpack.c.bf16 %v173_v47, %v171_v46  ;;  %v191_v43 = vld [vmem:[%s2235_s1 + $0x4e0] sm:$0xff]  ;;  %v193_v44 = vld [vmem:[%s2235_s1 + $0x4f0] sm:$0xff]  ;;  %v1014_v46 = vpack.c.bf16 %v194_v39, %v192_v35  ;;  %v196_v47 = vld [vmem:[%s2235_s1 + $0x508] sm:$0xff] }
  0x37   :  { %897 = vmatpush1.bf16.msra.mxu1 %v896_v48  ;;  %v1016_v54 = vpack.c.bf16 %v193_v44, %v191_v43  ;;  %v201_v4 = vld [vmem:[%s2235_s1 + $0x530] sm:$0xff]  ;;  %v28_v5 = vld [vmem:[%s2236_s0] sm:$0xff]  ;;  %v568_v14 = vld [vmem:[%s2237_s3 + $0x58] sm:$0xff] }
  0x38   :  { %899 = vmatprep.subr.bf16.mxu1 %v898_v51  ;;  %v198_v51 = vld [vmem:[%s2235_s1 + $0x518] sm:$0xff]  ;;  %v203_v16 = vld [vmem:[%s2235_s1 + $0x540] sm:$0xff]  ;;  %v205_v17 = vld [vmem:[%s2235_s1 + $0x550] sm:$0xff] }
  0x39   :  { %977 = vmatpush1.bf16.msra.mxu0 %v976_v59  ;;  %v177_v59 = vld [vmem:[%s2235_s1 + $0x470] sm:$0xff]  ;;  %v570_v25 = vld [vmem:[%s2237_s3 + $0x68] sm:$0xff]  ;;  %v572_v26 = vld [vmem:[%s2237_s3 + $0x78] sm:$0xff]  ;;  %v1028_v27 = vpack.c.bf16 %v205_v17, %v203_v16 }
  0x3a   :  { %979 = vmatprep.subr.bf16.mxu0 %v978_v63  ;;  %v182_v63 = vld [vmem:[%s2235_s1 + $0x498] sm:$0xff]  ;;  %v1000_v6 = vpack.c.bf16 %v177_v59, %v175_v58  ;;  %v1018_v58 = vpack.c.bf16 %v198_v51, %v196_v47  ;;  %v200_v59 = vld [vmem:[%s2235_s1 + $0x528] sm:$0xff]  ;;  %v567_v23 = vld [vmem:[%s2237_s3 + $0x50] sm:$0xff] }
  0x3b   :  { %901 = vmatpush1.bf16.msra.mxu1 %v900_v61  ;;  %v1002_v10 = vpack.c.bf16 %v182_v63, %v180_v60  ;;  %v1082_v60 = vpack.c.bf16 %v560_v53, %v558_v52  ;;  %v557_v61 = vld [vmem:[%s2237_s3] sm:$0xff]  ;;  %v202_v63 = vld [vmem:[%s2235_s1 + $0x538] sm:$0xff]  ;;  %v571_v35 = vld [vmem:[%s2237_s3 + $0x70] sm:$0xff] }
  0x3c   :  { %903 = vmatprep.subr.bf16.mxu1 %v902_v0  ;;  %v562_v0 = vld [vmem:[%s2237_s3 + $0x28] sm:$0xff]  ;;  %v575_v47 = vld [vmem:[%s2237_s3 + $0x90] sm:$0xff]  ;;  %v215_v52 = vld [vmem:[%s2235_s1 + $0x5a0] sm:$0xff] }
  0x3d   :  { %981 = vmatpush1.bf16.msra.mxu0 %v980_v7  ;;  %v179_v7 = vld [vmem:[%s2235_s1 + $0x480] sm:$0xff]  ;;  %v216_v44 = vld [vmem:[%s2235_s1 + $0x5a8] sm:$0xff]  ;;  %v217_v53 = vld [vmem:[%s2235_s1 + $0x5b0] sm:$0xff] }
  0x3e   :  { %983 = vmatprep.subr.bf16.mxu0 %v982_v11  ;;  %v184_v11 = vld [vmem:[%s2235_s1 + $0x4a8] sm:$0xff]  ;;  %v1004_v18 = vpack.c.bf16 %v181_v8, %v179_v7  ;;  %v1022_v7 = vpack.c.bf16 %v202_v63, %v200_v59  ;;  %v579_v59 = vld [vmem:[%s2237_s3 + $0xb0] sm:$0xff]  ;;  %v1040_v63 = vpack.c.bf16 %v217_v53, %v215_v52 }
  0x3f   :  { %905 = vmatpush1.bf16.msra.mxu1 %v904_v9  ;;  %v204_v8 = vld [vmem:[%s2235_s1 + $0x548] sm:$0xff]  ;;  %v1086_v9 = vpack.c.bf16 %v564_v1, %v562_v0  ;;  %v219_v0 = vld [vmem:[%s2235_s1 + $0x5c0] sm:$0xff]  ;;  %v221_v1 = vld [vmem:[%s2235_s1 + $0x5d0] sm:$0xff] }
  0x40   :  { %907 = vmatprep.subr.bf16.mxu1 %v906_v12  ;;  %v206_v12 = vld [vmem:[%s2235_s1 + $0x558] sm:$0xff]  ;;  %v220_v56 = vld [vmem:[%s2235_s1 + $0x5c8] sm:$0xff]  ;;  %v237_v52 = vld [vmem:[%s2235_s1 + $0x650] sm:$0xff] }
  0x41   :  { %985 = vmatpush1.bf16.msra.mxu0 %v984_v19  ;;  %v183_v19 = vld [vmem:[%s2235_s1 + $0x4a0] sm:$0xff]  ;;  %v228_v16 = vld [vmem:[%s2235_s1 + $0x608] sm:$0xff] }
  0x42   :  { %987 = vmatprep.subr.bf16.mxu0 %v986_v22  ;;  %v1006_v22 = vpack.c.bf16 %v186_v15, %v184_v11  ;;  %v1008_v30 = vpack.c.bf16 %v185_v20, %v183_v19  ;;  %v563_v11 = vld [vmem:[%s2237_s3 + $0x30] sm:$0xff]  ;;  %v1024_v15 = vpack.c.bf16 %v201_v4, %v199_v3  ;;  %v1026_v19 = vpack.c.bf16 %v206_v12, %v204_v8  ;;  %v208_v20 = vld [vmem:[%s2235_s1 + $0x568] sm:$0xff]  ;;  %v226_v8 = vld [vmem:[%s2235_s1 + $0x5f8] sm:$0xff] }
  0x43   :  { %909 = vmatpush1.bf16.msra.mxu1 %v908_v21  ;;  %v1090_v21 = vpack.c.bf16 %v568_v14, %v566_v13  ;;  %v224_v4 = vld [vmem:[%s2235_s1 + $0x5e8] sm:$0xff]  ;;  %v223_v12 = vld [vmem:[%s2235_s1 + $0x5e0] sm:$0xff]  ;;  %v225_v13 = vld [vmem:[%s2235_s1 + $0x5f0] sm:$0xff] }
  0x44   :  { %407 = vmatmul.mubr.f32.vlgmr.msra.gmra.mrb[0].mxu0 %v30_v29  ;;  %v94_v29 = vld [vmem:[%s2235_s1 + $0x1d8] sm:$0xff]  ;;  %911 = vmatprep.subr.bf16.mxu1 %v910_v24  ;;  %v240_v53 = vld [vmem:[%s2235_s1 + $0x668] sm:$0xff] }
  0x45   :  { %989 = vmatpush1.bf16.msra.mxu0 %v988_v32  ;;  %477 = vmatprep.mubr.f32.mxu0 %v33_v41  ;;  %v189_v32 = vld [vmem:[%s2235_s1 + $0x4d0] sm:$0xff]  ;;  %v914_v36 = vpack.c.bf16 %v94_v29, %v92_v28  ;;  %v98_v41 = vld [vmem:[%s2235_s1 + $0x1f8] sm:$0xff]  ;;  %v207_v28 = vld [vmem:[%s2235_s1 + $0x560] sm:$0xff] }
  0x46   :  { %991 = vmatprep.subr.bf16.mxu0 %v990_v37  ;;  %v91_v37 = vld [vmem:[%s2235_s1 + $0x1c0] sm:$0xff]  ;;  %v1012_v42 = vpack.c.bf16 %v189_v32, %v187_v31  ;;  %v918_v48 = vpack.c.bf16 %v98_v41, %v96_v40  ;;  %v210_v24 = vld [vmem:[%s2235_s1 + $0x578] sm:$0xff]  ;;  %v209_v29 = vld [vmem:[%s2235_s1 + $0x570] sm:$0xff] }
  0x47   :  { %913 = vmatpush1.bf16.msra.mxu1 %v912_v33  ;;  %v1030_v31 = vpack.c.bf16 %v210_v24, %v208_v20  ;;  %v212_v32 = vld [vmem:[%s2235_s1 + $0x588] sm:$0xff]  ;;  %v1094_v33 = vpack.c.bf16 %v572_v26, %v570_v25  ;;  %v1032_v39 = vpack.c.bf16 %v209_v29, %v207_v28  ;;  %v211_v40 = vld [vmem:[%s2235_s1 + $0x580] sm:$0xff]  ;;  %v213_v41 = vld [vmem:[%s2235_s1 + $0x590] sm:$0xff] }
  0x48   :  { %915 = vmatprep.subr.bf16.mxu1 %v914_v36  ;;  %v214_v36 = vld [vmem:[%s2235_s1 + $0x598] sm:$0xff]  ;;  %v1036_v51 = vpack.c.bf16 %v213_v41, %v211_v40  ;;  %v227_v26 = vld [vmem:[%s2235_s1 + $0x600] sm:$0xff]  ;;  %v232_v28 = vld [vmem:[%s2235_s1 + $0x628] sm:$0xff] }
  0x49   :  { %993 = vmatpush1.bf16.msra.mxu0 %v992_v45  ;;  %v916_v45 = vpack.c.bf16 %v93_v38, %v91_v37  ;;  %v574_v37 = vld [vmem:[%s2237_s3 + $0x88] sm:$0xff]  ;;  %v576_v38 = vld [vmem:[%s2237_s3 + $0x98] sm:$0xff]  ;;  %v1034_v43 = vpack.c.bf16 %v214_v36, %v212_v32  ;;  %v591_v32 = vld [vmem:[%s2237_s3 + $0x110] sm:$0xff] }
  0x4a   :  { %995 = vmatprep.subr.bf16.mxu0 %v994_v49  ;;  %v95_v49 = vld [vmem:[%s2235_s1 + $0x1e0] sm:$0xff]  ;;  %v230_v20 = vld [vmem:[%s2235_s1 + $0x618] sm:$0xff]  ;;  %v236_v40 = vld [vmem:[%s2235_s1 + $0x648] sm:$0xff] }
  0x4b   :  { %917 = vmatpush1.bf16.msra.mxu1 %v916_v45  ;;  %v1098_v45 = vpack.c.bf16 %v576_v38, %v574_v37  ;;  %v1050_v25 = vpack.c.bf16 %v230_v20, %v228_v16  ;;  %v231_v38 = vld [vmem:[%s2235_s1 + $0x620] sm:$0xff]  ;;  %v612_v20 = vld [vmem:[%s2237_s3 + $0x1b8] sm:$0xff] }
  0x4c   :  { %919 = vmatprep.subr.bf16.mxu1 %v918_v48  ;;  %v218_v48 = vld [vmem:[%s2235_s1 + $0x5b8] sm:$0xff] }
  0x4d   :  { %997 = vmatpush1.bf16.msra.mxu0 %v996_v57  ;;  %v920_v57 = vpack.c.bf16 %v97_v50, %v95_v49  ;;  %v578_v49 = vld [vmem:[%s2237_s3 + $0xa8] sm:$0xff]  ;;  %v580_v50 = vld [vmem:[%s2237_s3 + $0xb8] sm:$0xff]  ;;  %v1038_v55 = vpack.c.bf16 %v218_v48, %v216_v44  ;;  %v593_v44 = vld [vmem:[%s2237_s3 + $0x120] sm:$0xff] }
  0x4e   :  { %999 = vmatprep.subr.bf16.mxu0 %v998_v62  ;;  %v559_v62 = vld [vmem:[%s2237_s3 + $0x10] sm:$0xff] }
  0x4f   :  { %921 = vmatpush1.bf16.msra.mxu1 %v920_v57  ;;  %v1102_v57 = vpack.c.bf16 %v580_v50, %v578_v49  ;;  %v1189_v49 = vmov 0.0  }
  0x50   :  { %1083 = vmatprep.subr.bf16.mxu1 %v1082_v60  ;;  %v222_v60 = vld [vmem:[%s2235_s1 + $0x5d8] sm:$0xff] }
  0x51   :  { %1001 = vmatpush1.bf16.msra.mxu0 %v1000_v6  ;;  %v1084_v6 = vpack.c.bf16 %v559_v62, %v557_v61  ;;  %v582_v61 = vld [vmem:[%s2237_s3 + $0xc8] sm:$0xff]  ;;  %v584_v62 = vld [vmem:[%s2237_s3 + $0xd8] sm:$0xff]  ;;  %v1042_v3 = vpack.c.bf16 %v222_v60, %v220_v56 }
  0x52   :  { %1003 = vmatprep.subr.bf16.mxu0 %v1002_v10  ;;  %v561_v10 = vld [vmem:[%s2237_s3 + $0x20] sm:$0xff]  ;;  %336 = vmatmul.mubr.f32.vlgmr.msra.gmra.mrb[0].mxu1 %v28_v5  ;;  %v1106_v5 = vpack.c.bf16 %v584_v62, %v582_v61  ;;  %v604_v60 = vld [vmem:[%s2237_s3 + $0x178] sm:$0xff] }
  0x53   :  { %1085 = vmatpush1.bf16.msra.mxu1 %v1084_v6  ;;  %v581_v6 = vld [vmem:[%s2237_s3 + $0xc0] sm:$0xff] }
  0x54   :  { %1087 = vmatprep.subr.bf16.mxu1 %v1086_v9  ;;  %v586_v9 = vld [vmem:[%s2237_s3 + $0xe8] sm:$0xff] }
  0x55   :  { %1005 = vmatpush1.bf16.msra.mxu0 %v1004_v18  ;;  %v1088_v18 = vpack.c.bf16 %v563_v11, %v561_v10  ;;  %v588_v10 = vld [vmem:[%s2237_s3 + $0xf8] sm:$0xff]  ;;  %v1044_v11 = vpack.c.bf16 %v221_v1, %v219_v0  ;;  %v241_v0 = vld [vmem:[%s2235_s1 + $0x670] sm:$0xff]  ;;  %v244_v1 = vld [vmem:[%s2235_s1 + $0x688] sm:$0xff] }
  0x56   :  { %1007 = vmatprep.subr.bf16.mxu0 %v1006_v22  ;;  %v565_v22 = vld [vmem:[%s2237_s3 + $0x40] sm:$0xff]  ;;  %v1110_v17 = vpack.c.bf16 %v588_v10, %v586_v9 }
  0x57   :  { %1089 = vmatpush1.bf16.msra.mxu1 %v1088_v18  ;;  %v585_v18 = vld [vmem:[%s2237_s3 + $0xe0] sm:$0xff] }
  0x58   :  { %1091 = vmatprep.subr.bf16.mxu1 %v1090_v21  ;;  %v590_v21 = vld [vmem:[%s2237_s3 + $0x108] sm:$0xff] }
  0x59   :  { %1009 = vmatpush1.bf16.msra.mxu0 %v1008_v30  ;;  %v1092_v30 = vpack.c.bf16 %v567_v23, %v565_v22  ;;  %v592_v22 = vld [vmem:[%s2237_s3 + $0x118] sm:$0xff]  ;;  %v1048_v23 = vpack.c.bf16 %v225_v13, %v223_v12  ;;  %v245_v12 = vld [vmem:[%s2235_s1 + $0x690] sm:$0xff]  ;;  %v248_v13 = vld [vmem:[%s2235_s1 + $0x6a8] sm:$0xff] }
  0x5a   :  { %1011 = vmatprep.subr.bf16.mxu0 %v1010_v34  ;;  %v569_v34 = vld [vmem:[%s2237_s3 + $0x60] sm:$0xff]  ;;  %v1114_v29 = vpack.c.bf16 %v592_v22, %v590_v21 }
  0x5b   :  { %1093 = vmatpush1.bf16.msra.mxu1 %v1092_v30  ;;  %v234_v30 = vld [vmem:[%s2235_s1 + $0x638] sm:$0xff] }
  0x5c   :  { %1095 = vmatprep.subr.bf16.mxu1 %v1094_v33  ;;  %v594_v33 = vld [vmem:[%s2237_s3 + $0x128] sm:$0xff]  ;;  %v1054_v37 = vpack.c.bf16 %v234_v30, %v232_v28  ;;  %v611_v30 = vld [vmem:[%s2237_s3 + $0x1b0] sm:$0xff] }
  0x5d   :  { %1013 = vmatpush1.bf16.msra.mxu0 %v1012_v42  ;;  %v1096_v42 = vpack.c.bf16 %v571_v35, %v569_v34  ;;  %v596_v34 = vld [vmem:[%s2237_s3 + $0x138] sm:$0xff]  ;;  %v32_v35 = vld [vmem:[%s2236_s0 + $0x20] sm:$0xff] }
  0x5e   :  { %1015 = vmatprep.subr.bf16.mxu0 %v1014_v46  ;;  %v573_v46 = vld [vmem:[%s2237_s3 + $0x80] sm:$0xff] }
  0x5f   :  { %1097 = vmatpush1.bf16.msra.mxu1 %v1096_v42  ;;  %v238_v42 = vld [vmem:[%s2235_s1 + $0x658] sm:$0xff] }
  0x60   :  { %1099 = vmatprep.subr.bf16.mxu1 %v1098_v45  ;;  %v595_v45 = vld [vmem:[%s2237_s3 + $0x130] sm:$0xff]  ;;  %v1058_v50 = vpack.c.bf16 %v238_v42, %v236_v40  ;;  %v255_v40 = vld [vmem:[%s2235_s1 + $0x6e0] sm:$0xff] }
  0x61   :  { %1017 = vmatpush1.bf16.msra.mxu0 %v1016_v54  ;;  %v1100_v54 = vpack.c.bf16 %v575_v47, %v573_v46  ;;  %v598_v46 = vld [vmem:[%s2237_s3 + $0x148] sm:$0xff]  ;;  %v600_v47 = vld [vmem:[%s2237_s3 + $0x158] sm:$0xff] }
  0x62   :  { %1019 = vmatprep.subr.bf16.mxu0 %v1018_v58  ;;  %v577_v58 = vld [vmem:[%s2237_s3 + $0xa0] sm:$0xff]  ;;  %v1122_v56 = vpack.c.bf16 %v600_v47, %v598_v46 }
  0x63   :  { %1101 = vmatpush1.bf16.msra.mxu1 %v1100_v54  ;;  %v1120_v54 = vpack.c.bf16 %v595_v45, %v593_v44  ;;  %v614_v44 = vld [vmem:[%s2237_s3 + $0x1c8] sm:$0xff]  ;;  %v616_v45 = vld [vmem:[%s2237_s3 + $0x1d8] sm:$0xff]  ;;  %v613_v47 = vld [vmem:[%s2237_s3 + $0x1c0] sm:$0xff] }
  0x64   :  { %1103 = vmatprep.subr.bf16.mxu1 %v1102_v57  ;;  %v597_v57 = vld [vmem:[%s2237_s3 + $0x140] sm:$0xff]  ;;  %v1138_v46 = vpack.c.bf16 %v616_v45, %v614_v44  ;;  %v735_v45 = vld [vmem:[%s2238_s5 + $0xe8] sm:$0xff] }
  0x65   :  { %1021 = vmatpush1.bf16.msra.mxu0 %v1020_v2  ;;  %v1104_v2 = vpack.c.bf16 %v579_v59, %v577_v58  ;;  %v599_v58 = vld [vmem:[%s2237_s3 + $0x150] sm:$0xff]  ;;  %v602_v59 = vld [vmem:[%s2237_s3 + $0x168] sm:$0xff]  ;;  %v734_v44 = vld [vmem:[%s2238_s5 + $0xe0] sm:$0xff] }
  0x66   :  { %1023 = vmatprep.subr.bf16.mxu0 %v1022_v7  ;;  %v583_v7 = vld [vmem:[%s2237_s3 + $0xd0] sm:$0xff] }
  0x67   :  { %1105 = vmatpush1.bf16.msra.mxu1 %v1104_v2  ;;  %v1108_v14 = vpack.c.bf16 %v583_v7, %v581_v6  ;;  %v1124_v2 = vpack.c.bf16 %v599_v58, %v597_v57  ;;  %v603_v6 = vld [vmem:[%s2237_s3 + $0x170] sm:$0xff]  ;;  %v606_v7 = vld [vmem:[%s2237_s3 + $0x188] sm:$0xff] }
  0x68   :  { %1107 = vmatprep.subr.bf16.mxu1 %v1106_v5  ;;  %v601_v5 = vld [vmem:[%s2237_s3 + $0x160] sm:$0xff]  ;;  %v723_v57 = vld [vmem:[%s2238_s5 + $0x88] sm:$0xff] }
  0x69   :  { %1025 = vmatpush1.bf16.msra.mxu0 %v1024_v15  ;;  %v1046_v15 = vpack.c.bf16 %v226_v8, %v224_v4  ;;  %v1126_v4 = vpack.c.bf16 %v604_v60, %v602_v59  ;;  %v608_v8 = vld [vmem:[%s2237_s3 + $0x198] sm:$0xff] }
  0x6a   :  { %1027 = vmatprep.subr.bf16.mxu0 %v1026_v19  ;;  %v587_v19 = vld [vmem:[%s2237_s3 + $0xf0] sm:$0xff]  ;;  %v1130_v16 = vpack.c.bf16 %v608_v8, %v606_v7 }
  0x6b   :  { %1109 = vmatpush1.bf16.msra.mxu1 %v1108_v14  ;;  %v1112_v24 = vpack.c.bf16 %v587_v19, %v585_v18  ;;  %v1128_v14 = vpack.c.bf16 %v603_v6, %v601_v5  ;;  %v607_v18 = vld [vmem:[%s2237_s3 + $0x190] sm:$0xff]  ;;  %v610_v19 = vld [vmem:[%s2237_s3 + $0x1a8] sm:$0xff] }
  0x6c   :  { %1111 = vmatprep.subr.bf16.mxu1 %v1110_v17  ;;  %v605_v17 = vld [vmem:[%s2237_s3 + $0x180] sm:$0xff]  ;;  %v1134_v28 = vpack.c.bf16 %v612_v20, %v610_v19  ;;  %v709_v19 = vld [vmem:[%s2238_s5 + $0x18] sm:$0xff] }
  0x6d   :  { %1029 = vmatpush1.bf16.msra.mxu0 %v1028_v27  ;;  %v229_v27 = vld [vmem:[%s2235_s1 + $0x610] sm:$0xff]  ;;  %v726_v20 = vld [vmem:[%s2238_s5 + $0xa0] sm:$0xff] }
  0x6e   :  { %1031 = vmatprep.subr.bf16.mxu0 %v1030_v31  ;;  %v589_v31 = vld [vmem:[%s2237_s3 + $0x100] sm:$0xff]  ;;  %v1052_v36 = vpack.c.bf16 %v229_v27, %v227_v26  ;;  %v1132_v26 = vpack.c.bf16 %v607_v18, %v605_v17  ;;  %v254_v27 = vld [vmem:[%s2235_s1 + $0x6d8] sm:$0xff]  ;;  %v708_v18 = vld [vmem:[%s2238_s5 + $0x10] sm:$0xff] }
  0x6f   :  { %1113 = vmatpush1.bf16.msra.mxu1 %v1112_v24  ;;  %v1116_v41 = vpack.c.bf16 %v591_v32, %v589_v31  ;;  %v249_v24 = vld [vmem:[%s2235_s1 + $0x6b0] sm:$0xff] }
  0x70   :  { %1115 = vmatprep.subr.bf16.mxu1 %v1114_v29  ;;  %v609_v29 = vld [vmem:[%s2237_s3 + $0x1a0] sm:$0xff] }
  0x71   :  { %1033 = vmatpush1.bf16.msra.mxu0 %v1032_v39  ;;  %v233_v39 = vld [vmem:[%s2235_s1 + $0x630] sm:$0xff] }
  0x72   :  { %1035 = vmatprep.subr.bf16.mxu0 %v1034_v43  ;;  %v1118_v43 = vpack.c.bf16 %v596_v34, %v594_v33  ;;  %v1056_v48 = vpack.c.bf16 %v233_v39, %v231_v38  ;;  %v251_v33 = vld [vmem:[%s2235_s1 + $0x6c0] sm:$0xff]  ;;  %v253_v34 = vld [vmem:[%s2235_s1 + $0x6d0] sm:$0xff] }
  0x73   :  { %1117 = vmatpush1.bf16.msra.mxu1 %v1116_v41  ;;  %v1076_v38 = vpack.c.bf16 %v253_v34, %v251_v33  ;;  %v257_v41 = vld [vmem:[%s2235_s1 + $0x6f0] sm:$0xff]  ;;  %v731_v33 = vld [vmem:[%s2238_s5 + $0xc8] sm:$0xff] }
  0x74   :  { %1119 = vmatprep.subr.bf16.mxu1 %v1118_v43  ;;  %v1080_v42 = vpack.c.bf16 %v257_v41, %v255_v40  ;;  %v34_v43 = vld [vmem:[%s2236_s0 + $0x30] sm:$0xff] }
  0x75   :  { %1037 = vmatpush1.bf16.msra.mxu0 %v1036_v51  ;;  %v235_v51 = vld [vmem:[%s2235_s1 + $0x640] sm:$0xff] }
  0x76   :  { %1039 = vmatprep.subr.bf16.mxu0 %v1038_v55  ;;  %v242_v55 = vld [vmem:[%s2235_s1 + $0x678] sm:$0xff]  ;;  %v1060_v61 = vpack.c.bf16 %v237_v52, %v235_v51 }
  0x77   :  { %v1062_v62 = vpack.c.bf16 %v242_v55, %v240_v53  ;;  %1121 = vmatpush1.bf16.msra.mxu1 %v1120_v54  ;;  %v620_v51 = vld [vmem:[%s2237_s3 + $0x1f8] sm:$0xff]  ;;  %v617_v53 = vld [vmem:[%s2237_s3 + $0x1e0] sm:$0xff]  ;;  %v619_v54 = vld [vmem:[%s2237_s3 + $0x1f0] sm:$0xff] }
  0x78   :  { %1123 = vmatprep.subr.bf16.mxu1 %v1122_v56  ;;  %v1144_v55 = vpack.c.bf16 %v619_v54, %v617_v53  ;;  %v722_v56 = vld [vmem:[%s2238_s5 + $0x80] sm:$0xff]  ;;  %v720_v54 = vld [vmem:[%s2238_s5 + $0x70] sm:$0xff] }
  0x79   :  { %1041 = vmatpush1.bf16.msra.mxu0 %v1040_v63  ;;  %v239_v63 = vld [vmem:[%s2235_s1 + $0x660] sm:$0xff]  ;;  %v1146_v58 = vpack.c.bf16 %v723_v57, %v722_v56 }
  0x7a   :  { %1043 = vmatprep.subr.bf16.mxu0 %v1042_v3  ;;  %v246_v3 = vld [vmem:[%s2235_s1 + $0x698] sm:$0xff]  ;;  %v1064_v9 = vpack.c.bf16 %v241_v0, %v239_v63  ;;  %v259_v0 = vld [vmem:[%s2239_s2] sm:$0x3] }
  0x7b   :  { %v1066_v10 = vpack.c.bf16 %v246_v3, %v244_v1  ;;  %1125 = vmatpush1.bf16.msra.mxu1 %v1124_v2  ;;  %v621_v57 = vld [vmem:[%s2240_s4] sm:$0x3] }
  0x7c   :  { %1127 = vmatprep.subr.bf16.mxu1 %v1126_v4 }
  0x7d   :  { %1045 = vmatpush1.bf16.msra.mxu0 %v1044_v11  ;;  %v243_v11 = vld [vmem:[%s2235_s1 + $0x680] sm:$0xff] }
  0x7e   :  { %1047 = vmatprep.subr.bf16.mxu0 %v1046_v15  ;;  %v250_v15 = vld [vmem:[%s2235_s1 + $0x6b8] sm:$0xff]  ;;  %v1068_v21 = vpack.c.bf16 %v245_v12, %v243_v11  ;;  %v724_v12 = vld [vmem:[%s2238_s5 + $0x90] sm:$0xff] }
  0x7f   :  { %v1070_v22 = vpack.c.bf16 %v250_v15, %v248_v13  ;;  %1129 = vmatpush1.bf16.msra.mxu1 %v1128_v14  ;;  %v725_v13 = vld [vmem:[%s2238_s5 + $0x98] sm:$0xff] }
  0x80   :  { %1131 = vmatprep.subr.bf16.mxu1 %v1130_v16  ;;  %v1150_v17 = vpack.c.bf16 %v725_v13, %v724_v12 }
  0x81   :  { %1049 = vmatpush1.bf16.msra.mxu0 %v1048_v23  ;;  %v247_v23 = vld [vmem:[%s2235_s1 + $0x6a0] sm:$0xff] }
  0x82   :  { %1051 = vmatprep.subr.bf16.mxu0 %v1050_v25  ;;  %v252_v25 = vld [vmem:[%s2235_s1 + $0x6c8] sm:$0xff]  ;;  %v1072_v31 = vpack.c.bf16 %v249_v24, %v247_v23  ;;  %v710_v24 = vld [vmem:[%s2238_s5 + $0x20] sm:$0xff] }
  0x83   :  { %v1074_v32 = vpack.c.bf16 %v254_v27, %v252_v25  ;;  %1133 = vmatpush1.bf16.msra.mxu1 %v1132_v26  ;;  %v711_v25 = vld [vmem:[%s2238_s5 + $0x28] sm:$0xff]  ;;  %v728_v26 = vld [vmem:[%s2238_s5 + $0xb0] sm:$0xff]  ;;  %v729_v27 = vld [vmem:[%s2238_s5 + $0xb8] sm:$0xff] }
  0x84   :  { %478 = vmatmul.mubr.f32.vlgmr.msra.gmra.mrb[0].mxu0 %v32_v35  ;;  %v1136_v35 = vpack.c.bf16 %v611_v30, %v609_v29  ;;  %1135 = vmatprep.subr.bf16.mxu1 %v1134_v28  ;;  %v1156_v28 = vpack.c.bf16 %v711_v25, %v710_v24  ;;  %v1158_v29 = vpack.c.bf16 %v729_v27, %v728_v26  ;;  %v712_v30 = vld [vmem:[%s2238_s5 + $0x30] sm:$0xff] }
  0x85   :  { %1053 = vmatpush1.bf16.msra.mxu0 %v1052_v36  ;;  %548 = vmatprep.mubr.f32.mxu0 %v1189_v49  ;;  %v256_v36 = vld [vmem:[%s2235_s1 + $0x6e8] sm:$0xff] }
  0x86   :  { %1055 = vmatprep.subr.bf16.mxu0 %v1054_v37  ;;  %v258_v37 = vld [vmem:[%s2235_s1 + $0x6f8] sm:$0xff] }
  0x87   :  { %v1078_v39 = vpack.c.bf16 %v258_v37, %v256_v36  ;;  %1137 = vmatpush1.bf16.msra.mxu1 %v1136_v35  ;;  %v714_v36 = vld [vmem:[%s2238_s5 + $0x40] sm:$0xff]  ;;  %v715_v37 = vld [vmem:[%s2238_s5 + $0x48] sm:$0xff] }
  0x88   :  { %1139 = vmatprep.subr.bf16.mxu1 %v1138_v46  ;;  %v1164_v40 = vpack.c.bf16 %v715_v37, %v714_v36 }
  0x89   :  { %1057 = vmatpush1.bf16.msra.mxu0 %v1056_v48  ;;  %v615_v48 = vld [vmem:[%s2237_s3 + $0x1d0] sm:$0xff] }
  0x8a   :  { %1059 = vmatprep.subr.bf16.mxu0 %v1058_v50  ;;  %v1140_v49 = vpack.c.bf16 %v615_v48, %v613_v47  ;;  %v618_v50 = vld [vmem:[%s2237_s3 + $0x1e8] sm:$0xff]  ;;  %v1170_v47 = vpack.c.bf16 %v735_v45, %v734_v44  ;;  %v718_v48 = vld [vmem:[%s2238_s5 + $0x60] sm:$0xff] }
  0x8b   :  { %v1142_v52 = vpack.c.bf16 %v620_v51, %v618_v50  ;;  %v736_v51 = vld [vmem:[%s2238_s5 + $0xf0] sm:$0xff] }
  0x8c   :  { %1141 = vmatpush1.bf16.msra.mxu1 %v1140_v49  ;;  %v719_v49 = vld [vmem:[%s2238_s5 + $0x68] sm:$0xff] }
  0x8d   :  { %1061 = vmatpush1.bf16.msra.mxu0 %v1060_v61  ;;  %1143 = vmatprep.subr.bf16.mxu1 %v1142_v52  ;;  %v261_v61 = vlaneseq  ;;  %v1172_v50 = vpack.c.bf16 %v719_v49, %v718_v48  ;;  %v737_v52 = vld [vmem:[%s2238_s5 + $0xf8] sm:$0xff] }
  0x8e   :  { %1063 = vmatprep.subr.bf16.mxu0 %v1062_v62  ;;  %v1174_v53 = vpack.c.bf16 %v737_v52, %v736_v51 }
  0x8f   :  { %v2121_v62 = vshrl.u32 %v261_v61, 7 }
  0x90   :  { %1145 = vmatpush1.bf16.msra.mxu1 %v1144_v55  ;;  %v721_v55 = vld [vmem:[%s2238_s5 + $0x78] sm:$0xff] }
  0x91   :  { %1065 = vmatpush1.bf16.msra.mxu0 %v1064_v9  ;;  %1147 = vmatprep.subr.bf16.mxu1 %v1146_v58  ;;  %v263_v63 = vsub.s32 0, %v2121_v62  ;;  %v267_v1 = vsub.s32 1, %v2121_v62  ;;  %v706_v9 = vld [vmem:[%s2238_s5] sm:$0xff]  ;;  %v1176_v56 = vpack.c.bf16 %v721_v55, %v720_v54 }
  0x92   :  { %1067 = vmatprep.subr.bf16.mxu0 %v1066_v10  ;;  %v707_v10 = vld [vmem:[%s2238_s5 + $0x8] sm:$0xff] }
  0x93   :  { %v264_v2 = vrot.slane %v259_v0, %v263_v63  ;;  %v268_v3 = vrot.slane %v259_v0, %v267_v1  ;;  %v1148_v15 = vpack.c.bf16 %v707_v10, %v706_v9  ;;  %v626_v58 = vrot.slane %v621_v57, %v263_v63 }
  0x95   :  { %1069 = vmatpush1.bf16.msra.mxu0 %v1068_v21  ;;  %v727_v21 = vld [vmem:[%s2238_s5 + $0xa8] sm:$0xff] }
  0x96   :  { %1071 = vmatprep.subr.bf16.mxu0 %v1070_v22  ;;  %v1152_v22 = vpack.c.bf16 %v709_v19, %v708_v18  ;;  %v1154_v23 = vpack.c.bf16 %v727_v21, %v726_v20 }
  0x99   :  { %1073 = vmatpush1.bf16.msra.mxu0 %v1072_v31  ;;  %v713_v31 = vld [vmem:[%s2238_s5 + $0x38] sm:$0xff] }
  0x9a   :  { %1075 = vmatprep.subr.bf16.mxu0 %v1074_v32  ;;  %v730_v32 = vld [vmem:[%s2238_s5 + $0xc0] sm:$0xff]  ;;  %v1160_v34 = vpack.c.bf16 %v713_v31, %v712_v30 }
  0x9b   :  { %v1162_v35 = vpack.c.bf16 %v731_v33, %v730_v32 }
  0x9d   :  { %1077 = vmatpush1.bf16.msra.mxu0 %v1076_v38  ;;  %v732_v38 = vld [vmem:[%s2238_s5 + $0xd0] sm:$0xff] }
  0x9e   :  { %1079 = vmatprep.subr.bf16.mxu0 %v1078_v39  ;;  %v733_v39 = vld [vmem:[%s2238_s5 + $0xd8] sm:$0xff] }
  0x9f   :  { %v1166_v41 = vpack.c.bf16 %v733_v39, %v732_v38 }
  0xa1   :  { %1081 = vmatpush1.bf16.msra.mxu0 %v1080_v42  ;;  %v716_v42 = vld [vmem:[%s2238_s5 + $0x50] sm:$0xff] }
  0xa4   :  { %549 = vmatmul.mubr.f32.vlgmr.msra.gmra.mrb[0].mxu0 %v34_v43  ;;  %v717_v43 = vld [vmem:[%s2238_s5 + $0x58] sm:$0xff] }
  0xa5   :  { %v1168_v46 = vpack.c.bf16 %v717_v43, %v716_v42 }
 0x125   :  { %v337_v59 = vpop.f32.mrb[0].mxu1 }
 0x126   :  { %v339_v60 = vpop.f32.mrb[1].mxu1  ;;  %v338_v4 = vadd.f32 %v337_v59, %v264_v2  ;;  %v630_v59 = vrot.slane %v621_v57, %v267_v1 }
 0x127   :  { %v340_v5 = vadd.f32 %v339_v60, %v268_v3 }
 0x177   :  { %v550_v6 = vpop.f32.mrb[0].mxu0 }
 0x178   :  { %v1179_v7 = vadd.f32 %v550_v6, %v338_v4  ;;  %v552_v8 = vpop.f32.mrb[1].mxu0 }
 0x179   :  { %v1181_v11 = vadd.f32 %v552_v8, %v340_v5  ;;  %v12_v5 = vstv %s2241_s6 }
 0x17a   :  { %v555_v16 = vmax.f32 %v1179_v7, 0.0  ;;  %13 = vst [vmem:[#allocation2] sm:$0x1] %v12_v5 }
 0x17b   :  { %v556_v14 = vmax.f32 %v1181_v11, 0.0 }
 0x17d   :  { %697 = vmatprep.mubr.f32.mxu1 %v556_v14 }
 0x17e   :  { %698 = vmatmul.mubr.f32.vlgmr.msra.gmra.mrb[2].mxu1 %v555_v16 }
 0x17f   :  { %1149 = vmatpush3.bf16.msra.mxu1 %v1148_v15 }
 0x180   :  { %1151 = vmatprep.subr.bf16.mxu1 %v1150_v17 }
 0x181   :  { %v822_v7 = vld [vmem:[#allocation2] ss:$0 sm:$0xff] }
 0x183   :  { %1153 = vmatpush3.bf16.msra.mxu1 %v1152_v22 }
 0x184   :  { %1155 = vmatprep.subr.bf16.mxu1 %v1154_v23 }
 0x187   :  { %1157 = vmatpush3.bf16.msra.mxu1 %v1156_v28 }
 0x188   :  { %1159 = vmatprep.subr.bf16.mxu1 %v1158_v29 }
 0x18b   :  { %1161 = vmatpush3.bf16.msra.mxu1 %v1160_v34 }
 0x18c   :  { %1163 = vmatprep.subr.bf16.mxu1 %v1162_v35 }
 0x18f   :  { %1165 = vmatpush3.bf16.msra.mxu1 %v1164_v40 }
 0x190   :  { %1167 = vmatprep.subr.bf16.mxu1 %v1166_v41 }
 0x193   :  { %1169 = vmatpush3.bf16.msra.mxu1 %v1168_v46 }
 0x194   :  { %1171 = vmatprep.subr.bf16.mxu1 %v1170_v47 }
 0x197   :  { %1173 = vmatpush3.bf16.msra.mxu1 %v1172_v50 }
 0x198   :  { %1175 = vmatprep.subr.bf16.mxu1 %v1174_v53 }
 0x19b   :  { %1177 = vmatpush3.bf16.msra.mxu1 %v1176_v56 }
 0x251   :  { %v699_v60 = vpop.f32.mrb[2].mxu1 }
 0x252   :  { %v700_v61 = vadd.f32 %v699_v60, %v626_v58  ;;  %v701_v0 = vpop.f32.mrb[3].mxu1 }
 0x253   :  { %v702_v2 = vadd.f32 %v701_v0, %v630_v59 }
 0x254   :  { %v704_v4 = vmax.f32 %v700_v61, 0.0 }
 0x255   :  { %v705_v3 = vmax.f32 %v702_v2, 0.0 }
 0x257   :  { %809 = vmatprep.mubr.f32.mxu1 %v705_v3 }
 0x258   :  { %810 = vmatmul.mubr.f32.vlgmr.msra.gmra.mrb[4].mxu1 %v704_v4 }
 0x32b   :  { %v855_v6 = vpop.f32.mrb[4].mxu1 }
 0x32c   :  { %v856_v8 = vpop.f32.mrb[5].mxu1 }
 0x32d   :  { %v857_v63 = vadd.f32 %v856_v8, %v855_v6 }
 0x32f   :  { %v812_v9 = vadd.f32 %v857_v63, %v822_v7 }
 0x331   :  { %1187 = vtanh.f32 %v812_v9 }
 0x33b   :  { %v1188_v62 = vpop.eup %1187 }
 0x33c   :  { %817 = vst.msk [vmem:[%s2242_s7] sm:$0xff] %vm816_vm0, %v1188_v62 }

</bundles_post_ra>
